<compile_context>
chip_gen: v7x
topology: tpu7x:2x2x1
jax: 0.10.0
libtpu: 0.0.40
codegen_flags: <defaults>
</compile_context>

<pallas_src>
import functools

import jax
import jax.numpy as jnp
from jax import lax
from jax.experimental import pallas as pl
from jax.experimental.pallas import tpu as pltpu


# Finite "minus infinity": avoids inf-inf NaNs on masked columns.
_NEG_INF = -1e30


def _vmem_cap_bytes():
    try:
        return int(pltpu.get_tpu_info().vmem_capacity_bytes * 0.8)
    except Exception:
        return 48 * 1024 * 1024  # safe on every generation (v7x physical = 64 MiB)


# ---------------------------------------------------------------------------
# KV-resident path: K/V fit comfortably in VMEM -> one-shot softmax per q tile,
# K/V DMA'd once per batch (block index depends only on b).
# ---------------------------------------------------------------------------
def _sdpa_resident_kernel(q_ref, k_ref, v_ref, o_ref, *, inv_temperature, matmul_dtype):
    # q_ref: (block_q, D), k_ref: (Lk, D), v_ref: (Lk, Dv), o_ref: (block_q, Dv)
    q = (q_ref[...].astype(jnp.float32) * inv_temperature).astype(matmul_dtype)
    k = k_ref[...].astype(matmul_dtype)
    # scores = q @ k^T (contract last dims -> no materialized transpose)
    s = lax.dot_general(q, k, (((1,), (1,)), ((), ())),
                        preferred_element_type=jnp.float32)
    m = jnp.max(s, axis=-1, keepdims=True)
    p = jnp.exp(s - m)
    l = jnp.sum(p, axis=-1, keepdims=True)
    o = lax.dot_general(p.astype(matmul_dtype), v_ref[...].astype(matmul_dtype),
                        (((1,), (0,)), ((), ())), preferred_element_type=jnp.float32)
    # TODO(synk): nn.Dropout(p=0.1) is identity in eval mode; training-mode random
    # masking of the attention probabilities is intentionally not applied here.
    o_ref[...] = (o * pl.reciprocal(l, approx=True)).astype(o_ref.dtype)


# ---------------------------------------------------------------------------
# Flash path: online softmax over Lk tiles (reduction axis last, "arbitrary").
# ---------------------------------------------------------------------------
def _sdpa_flash_kernel(q_ref, k_ref, v_ref, o_ref, qs_sc, m_sc, l_sc, acc_sc, *,
                       inv_temperature, lk_valid, block_k, need_k_mask, matmul_dtype):
    # q_ref: (block_q, D), k_ref: (block_k, D), v_ref: (block_k, Dv), o_ref: (block_q, Dv)
    kv = pl.program_id(2)

    @pl.when(kv == 0)
    def _init():
        # Hoisted: fold 1/temperature into q and downcast ONCE per q-tile.
        qs_sc[...] = (q_ref[...].astype(jnp.float32) * inv_temperature).astype(matmul_dtype)
        m_sc[...] = jnp.full(m_sc.shape, _NEG_INF, m_sc.dtype)
        l_sc[...] = jnp.zeros(l_sc.shape, l_sc.dtype)
        acc_sc[...] = jnp.zeros(acc_sc.shape, acc_sc.dtype)

    k = k_ref[...].astype(matmul_dtype)
    s = lax.dot_general(qs_sc[...], k, (((1,), (1,)), ((), ())),
                        preferred_element_type=jnp.float32)

    if need_k_mask:  # static: only emitted when the K/V tail was zero-padded
        col_ok = (kv * block_k + lax.broadcasted_iota(jnp.int32, s.shape, 1)) < lk_valid
        s = jnp.where(col_ok, s, _NEG_INF)

    # Online softmax update (elementwise math in f32).
    m_prev = m_sc[...]
    m_new = jnp.maximum(m_prev, jnp.max(s, axis=-1, keepdims=True))
    alpha = jnp.exp(m_prev - m_new)
    p = jnp.exp(s - m_new)
    if need_k_mask:
        p = jnp.where(col_ok, p, 0.0)  # masked columns contribute exactly nothing
    l_sc[...] = alpha * l_sc[...] + jnp.sum(p, axis=-1, keepdims=True)
    acc_sc[...] = alpha * acc_sc[...] + lax.dot_general(
        p.astype(matmul_dtype), v_ref[...].astype(matmul_dtype),
        (((1,), (0,)), ((), ())), preferred_element_type=jnp.float32)
    m_sc[...] = m_new

    # TODO(synk): nn.Dropout(p=0.1) is identity in eval mode; not applied here.

    @pl.when(kv == pl.num_programs(2) - 1)
    def _finalize():
        # Deferred normalization: one reciprocal-scale of the (block_q, Dv) accumulator.
        o_ref[...] = (acc_sc[...] * pl.reciprocal(l_sc[...], approx=True)
                      ).astype(o_ref.dtype)


def scaled_dot_product_attention(q, k, v, temperature, *, matmul_dtype=None,
                                 block_q=None, block_k=None, use_flash=None,
                                 kv_resident_max_bytes=4 * 1024 * 1024):
    """q: (B, Lq, D), k: (B, Lk, D), v: (B, Lk, Dv) -> (B, Lq, Dv)."""
    B, Lq, D = q.shape
    Bk, Lk, Dk = k.shape
    Bv, Lkv, Dv = v.shape
    assert (Bk, Dk) == (B, D) and (Bv, Lkv) == (B, Lk)

    out_dtype = q.dtype
    if matmul_dtype is None:
        # MXU-native operand dtype on all generations; softmax/accum math stays f32.
        matmul_dtype = jnp.bfloat16

    in_item = jnp.dtype(q.dtype).itemsize
    out_item = jnp.dtype(out_dtype).itemsize
    mm_item = jnp.dtype(matmul_dtype).itemsize
    inv_temperature = 1.0 / float(temperature)
    vmem_cap = _vmem_cap_bytes()

    # q tile: full Lq when small (no padding, no edge blocks), otherwise 256-row tiles.
    if block_q is None:
        block_q = Lq if Lq <= 256 else 256
    n_q = pl.cdiv(Lq, block_q)

    if use_flash is None:
        kv_bytes = Lk * (D + Dv) * in_item
        use_flash = not (kv_bytes <= kv_resident_max_bytes and Lk <= 4096)

    cost = pl.CostEstimate(
        flops=int(2 * B * Lq * Lk * (D + Dv)),
        transcendentals=int(B * Lq * Lk),
        bytes_accessed=int((q.size + k.size + v.size) * in_item + B * Lq * Dv * out_item),
    )

    if not use_flash:
        # ------------------------- KV-resident path -------------------------
        kernel = functools.partial(_sdpa_resident_kernel,
                                   inv_temperature=inv_temperature,
                                   matmul_dtype=matmul_dtype)
        per_step = (2 * block_q * D * in_item
                    + 2 * Lk * (D + Dv) * in_item
                    + 2 * block_q * Dv * out_item
                    + 3 * block_q * Lk * 4)              # s / p / mask temporaries
        vmem_limit = int(min(max(2 * per_step, 16 * 1024 * 1024), vmem_cap))

        return pl.pallas_call(
            kernel,
            out_shape=jax.ShapeDtypeStruct((B, Lq, Dv), out_dtype),
            grid_spec=pltpu.PrefetchScalarGridSpec(
                num_scalar_prefetch=0,
                grid=(B, n_q),
                in_specs=[
                    pl.BlockSpec((None, block_q, D), lambda b, qi: (b, qi, 0)),
                    # K/V indexed by batch only -> DMA'd once per batch, reused for all q tiles.
                    pl.BlockSpec((None, Lk, D), lambda b, qi: (b, 0, 0)),
                    pl.BlockSpec((None, Lk, Dv), lambda b, qi: (b, 0, 0)),
                ],
                out_specs=pl.BlockSpec((None, block_q, Dv), lambda b, qi: (b, qi, 0)),
            ),
            compiler_params=pltpu.CompilerParams(
                dimension_semantics=("parallel", "parallel"),
                vmem_limit_bytes=vmem_limit,
            ),
            cost_estimate=cost,
        )(q, k, v)

    # ----------------------------- Flash path -----------------------------
    if block_k is None:
        block_k = min(512, (Lk + 127) // 128 * 128)
    n_k = pl.cdiv(Lk, block_k)
    Lkp = n_k * block_k
    need_k_mask = (Lkp != Lk)

    # Single wrapper pass over K/V: zero-pad the tail only when needed, and fuse the
    # downcast to matmul_dtype so the streamed K/V HBM bytes are halved (bf16).
    if need_k_mask:
        kp = jnp.pad(k, ((0, 0), (0, Lkp - Lk), (0, 0))).astype(matmul_dtype)
        vp = jnp.pad(v, ((0, 0), (0, Lkp - Lk), (0, 0))).astype(matmul_dtype)
    else:
        kp = k.astype(matmul_dtype)
        vp = v.astype(matmul_dtype)

    kernel = functools.partial(_sdpa_flash_kernel,
                               inv_temperature=inv_temperature,
                               lk_valid=Lk, block_k=block_k,
                               need_k_mask=need_k_mask,
                               matmul_dtype=matmul_dtype)

    per_step = (2 * block_q * D * in_item
                + 2 * block_k * (D + Dv) * mm_item
                + 2 * block_q * Dv * out_item
                + block_q * D * mm_item                  # hoisted q scratch
                + block_q * (2 + Dv) * 4                 # m / l / acc scratch
                + 3 * block_q * block_k * 4)             # s / p / mask temporaries
    vmem_limit = int(min(max(2 * per_step, 16 * 1024 * 1024), vmem_cap))

    return pl.pallas_call(
        kernel,
        out_shape=jax.ShapeDtypeStruct((B, Lq, Dv), out_dtype),
        grid_spec=pltpu.PrefetchScalarGridSpec(
            num_scalar_prefetch=0,
            grid=(B, n_q, n_k),
            in_specs=[
                pl.BlockSpec((None, block_q, D), lambda b, qi, ki: (b, qi, 0)),
                pl.BlockSpec((None, block_k, D), lambda b, qi, ki: (b, ki, 0)),
                pl.BlockSpec((None, block_k, Dv), lambda b, qi, ki: (b, ki, 0)),
            ],
            out_specs=pl.BlockSpec((None, block_q, Dv), lambda b, qi, ki: (b, qi, 0)),
            scratch_shapes=[
                pltpu.VMEM((block_q, D), matmul_dtype),   # hoisted, pre-scaled q
                pltpu.VMEM((block_q, 1), jnp.float32),    # running max m
                pltpu.VMEM((block_q, 1), jnp.float32),    # running denom l
                pltpu.VMEM((block_q, Dv), jnp.float32),   # running output accumulator
            ],
        ),
        compiler_params=pltpu.CompilerParams(
            dimension_semantics=("parallel", "parallel", "arbitrary"),
            vmem_limit_bytes=vmem_limit,
        ),
        cost_estimate=cost,
    )(q, kp, vp)


if __name__ == "__main__":
    # Deterministic module parameters (__init__): temperature, ba (ba unused in forward).
    D = 32
    temperature = float(D) ** 0.5          # typical: sqrt(d_k)
    ba = jnp.float32(0.5)                  # nn.Parameter, not used in forward

    def reference(q, k, v):
        s = jnp.einsum("bqd,bkd->bqk", q, k) / temperature
        a = jax.nn.softmax(s, axis=2)
        return jnp.einsum("bqk,bkd->bqd", a, v)

    # ---- Test 1: small shapes (KV-resident path) ----
    B, Lq, Lk, Dv = 2, 8, 8, 32
    key = jax.random.PRNGKey(0)
    kq, kk, kv_ = jax.random.split(key, 3)
    q = jax.random.normal(kq, (B, Lq, D), dtype=jnp.float32)
    k = jax.random.normal(kk, (B, Lk, D), dtype=jnp.float32)
    v = jax.random.normal(kv_, (B, Lk, Dv), dtype=jnp.float32)

    out = jax.block_until_ready(scaled_dot_product_attention(q, k, v, temperature))
    o_ref = reference(q, k, v)
    assert out.shape == (B, Lq, Dv)
    # Tolerance accounts for bf16 MXU operands + approximate reciprocal; the math
    # (pre-scaled q, deferred normalization) is otherwise identical to the reference.
    assert jnp.allclose(out, o_ref, atol=2e-2, rtol=2e-2), \
        float(jnp.max(jnp.abs(out - o_ref)))

    # ---- Test 2: force the flash (online-softmax) path incl. K-tail masking ----
    B2, Lq2, Lk2 = 2, 24, 200
    k2q, k2k, k2v = jax.random.split(jax.random.PRNGKey(0), 3)
    q2 = jax.random.normal(k2q, (B2, Lq2, D), dtype=jnp.float32)
    k2 = jax.random.normal(k2k, (B2, Lk2, D), dtype=jnp.float32)
    v2 = jax.random.normal(k2v, (B2, Lk2, Dv), dtype=jnp.float32)
    out2 = jax.block_until_ready(
        scaled_dot_product_attention(q2, k2, v2, temperature,
                                     use_flash=True, block_k=128))
    o2_ref = reference(q2, k2, v2)
    assert out2.shape == (B2, Lq2, Dv)
    assert jnp.allclose(out2, o2_ref, atol=2e-2, rtol=2e-2), \
        float(jnp.max(jnp.abs(out2 - o2_ref)))

    print("KERNEL_OK")
</pallas_src>

<mosaic_0001>
module attributes {stable_mosaic.version = 11 : i64} {
  func.func @_sdpa_resident_kernel(%arg0: i32, %arg1: i32, %arg2: memref<1x8x32xf32, #tpu.memory_space<vmem>>, %arg3: memref<1x8x32xf32, #tpu.memory_space<vmem>>, %arg4: memref<1x8x32xf32, #tpu.memory_space<vmem>>, %arg5: memref<1x8x32xf32, #tpu.memory_space<vmem>>) attributes {dimension_semantics = [#tpu.dimension_semantics<parallel>, #tpu.dimension_semantics<parallel>], iteration_bounds = array<i64: 2, 1>, scalar_prefetch = 0 : i64, scratch_operands = 0 : i64, tpu.core_type = #tpu.core_type<tc>, window_params = [{transform_indices = @transform_0, window_bounds = array<i64: 1, 8, 32>}, {transform_indices = @transform_1, window_bounds = array<i64: 1, 8, 32>}, {transform_indices = @transform_2, window_bounds = array<i64: 1, 8, 32>}, {transform_indices = @transform_3, window_bounds = array<i64: 1, 8, 32>}]} {
    %c0 = arith.constant 0 : index
    %c0_0 = arith.constant 0 : index
    %c0_1 = arith.constant 0 : index
    %0 = vector.load %arg2[%c0, %c0_0, %c0_1] : memref<1x8x32xf32, #tpu.memory_space<vmem>>, vector<1x8x32xf32>
    %1 = vector.shape_cast %0 : vector<1x8x32xf32> to vector<8x32xf32>
    %cst = arith.constant 0.176776692 : f32
    %2 = vector.broadcast %cst : f32 to vector<8x32xf32>
    %3 = arith.mulf %1, %2 : vector<8x32xf32>
    %4 = arith.truncf %3 : vector<8x32xf32> to vector<8x32xbf16>
    %c0_2 = arith.constant 0 : index
    %c0_3 = arith.constant 0 : index
    %c0_4 = arith.constant 0 : index
    %5 = vector.load %arg3[%c0_2, %c0_3, %c0_4] : memref<1x8x32xf32, #tpu.memory_space<vmem>>, vector<1x8x32xf32>
    %6 = vector.shape_cast %5 : vector<1x8x32xf32> to vector<8x32xf32>
    %7 = arith.truncf %6 : vector<8x32xf32> to vector<8x32xbf16>
    %cst_5 = arith.constant dense<0.000000e+00> : vector<8x8xf32>
    %8 = tpu.matmul %4, %7, %cst_5 {dimension_numbers = #tpu.dot_dimension_numbers<[1], [1], [0], [0], [0, 0, 1, 0], [], []>} : vector<8x32xbf16>, vector<8x32xbf16>, vector<8x8xf32> -> vector<8x8xf32>
    %cst_6 = arith.constant dense<0xFF800000> : vector<8xf32>
    %9 = vector.multi_reduction <maximumf>, %8, %cst_6 [1] : vector<8x8xf32> to vector<8xf32>
    %10 = vector.shape_cast %9 : vector<8xf32> to vector<8x1xf32>
    %11 = vector.broadcast %10 : vector<8x1xf32> to vector<8x8xf32>
    %12 = arith.subf %8, %11 : vector<8x8xf32>
    %13 = math.exp %12 : vector<8x8xf32>
    %cst_7 = arith.constant dense<0.000000e+00> : vector<8xf32>
    %14 = vector.multi_reduction <add>, %13, %cst_7 [1] : vector<8x8xf32> to vector<8xf32>
    %15 = vector.shape_cast %14 : vector<8xf32> to vector<8x1xf32>
    %16 = arith.truncf %13 : vector<8x8xf32> to vector<8x8xbf16>
    %c0_8 = arith.constant 0 : index
    %c0_9 = arith.constant 0 : index
    %c0_10 = arith.constant 0 : index
    %17 = vector.load %arg4[%c0_8, %c0_9, %c0_10] : memref<1x8x32xf32, #tpu.memory_space<vmem>>, vector<1x8x32xf32>
    %18 = vector.shape_cast %17 : vector<1x8x32xf32> to vector<8x32xf32>
    %19 = arith.truncf %18 : vector<8x32xf32> to vector<8x32xbf16>
    %cst_11 = arith.constant dense<0.000000e+00> : vector<8x32xf32>
    %20 = tpu.matmul %16, %19, %cst_11 {dimension_numbers = #tpu.dot_dimension_numbers<[1], [0], [0], [1], [0, 0, 1, 1], [], []>} : vector<8x8xbf16>, vector<8x32xbf16>, vector<8x32xf32> -> vector<8x32xf32>
    %21 = tpu.reciprocal %15 {approx = true} : vector<8x1xf32> -> vector<8x1xf32>
    %22 = vector.broadcast %21 : vector<8x1xf32> to vector<8x32xf32>
    %23 = arith.mulf %20, %22 : vector<8x32xf32>
    %c0_12 = arith.constant 0 : index
    %c0_13 = arith.constant 0 : index
    %c0_14 = arith.constant 0 : index
    %24 = vector.load %arg5[%c0_12, %c0_13, %c0_14] : memref<1x8x32xf32, #tpu.memory_space<vmem>>, vector<1x8x32xf32>
    %25 = vector.shape_cast %24 : vector<1x8x32xf32> to vector<8x32xf32>
    %26 = vector.shape_cast %23 : vector<8x32xf32> to vector<1x8x32xf32>
    tpu.vector_store %arg5[%c0_12, %c0_13, %c0_14], %26 {strides = array<i32>} : memref<1x8x32xf32, #tpu.memory_space<vmem>>, vector<1x8x32xf32>,
    return
  }
  func.func @transform_0(%arg0: i32, %arg1: i32) -> (i32, i32, i32) {
    %c0_i32 = arith.constant 0 : i32
    %c0_i32_0 = arith.constant 0 : i32
    return %arg0, %arg1, %c0_i32 : i32, i32, i32
  }
  func.func @transform_1(%arg0: i32, %arg1: i32) -> (i32, i32, i32) {
    %c0_i32 = arith.constant 0 : i32
    %c0_i32_0 = arith.constant 0 : i32
    %c0_i32_1 = arith.constant 0 : i32
    return %arg0, %c0_i32, %c0_i32_0 : i32, i32, i32
  }
  func.func @transform_2(%arg0: i32, %arg1: i32) -> (i32, i32, i32) {
    %c0_i32 = arith.constant 0 : i32
    %c0_i32_0 = arith.constant 0 : i32
    %c0_i32_1 = arith.constant 0 : i32
    return %arg0, %c0_i32, %c0_i32_0 : i32, i32, i32
  }
  func.func @transform_3(%arg0: i32, %arg1: i32) -> (i32, i32, i32) {
    %c0_i32 = arith.constant 0 : i32
    %c0_i32_0 = arith.constant 0 : i32
    return %arg0, %arg1, %c0_i32 : i32, i32, i32
  }
}

</mosaic_0001>

<bundles_post_ra>
// kernel: tpu_custom_call.1
= control target key start
LH: loop header
LB: loop body
LE: loop exit
PB: predicated region body
PF: predicated region fallthrough
CT: control target
= control target key end

     0   :  { %s1117_s0 = inlined_call_operand.hbm [shape: f32[2,8,32], index: 0, kind: input, shape index: {}]   ;;  %s1118_s1 = inlined_call_operand.hbm [shape: f32[2,8,32], index: 1, kind: input, shape index: {}]   ;;  %s1119_s2 = inlined_call_operand.hbm [shape: f32[2,8,32], index: 2, kind: input, shape index: {}]   ;;  %s1120_s3 = inlined_call_operand.hbm [shape: f32[2,8,32], index: 3, kind: output, shape index: {}]  }
   0x1   :  { %1126 = sst [smem:[#allocation15_spill]] %s1118_s1 }
   0x2   :  { %8 = vsyncpa [#allocation3], 0 }
   0x3   :  { %10 = vsyncpa [#allocation3 + $0x1], 0 }
   0x4   :  { %11 = vsyncpa [#allocation6], 0 }
   0x5   :  { %13 = vsyncpa [#allocation6 + $0x1], 0 }
   0x6   :  { %14 = vsyncpa [#allocation4], 0 }
   0x7   :  { %16 = vsyncpa [#allocation4 + $0x1], 0  ;;  %s847_s12 = smov 0   ;;  %s849_s13 = smov 0  }
   0x8   :  { %s851_s14 = smov 0   ;;  %s853_s15 = smov 0  }
   0x9   :  { %s855_s16 = smov 0   ;;  %s857_s17 = smov 0  }
   0xa LB: > { %1127 = sst [smem:[#allocation12_spill]] %s815_s16  ;;  %s878_s18 = sadd.s32 4294967295, %s819_s17   ;;  %s819_s17 = sphi %s857_s17, %s22_s17   ;;  %s815_s16 = sphi %s855_s16, %s1148_s16   ;;  %s811_s15 = sphi %s853_s15, %s1147_s15   ;;  %s807_s14 = sphi %s851_s14, %s1151_s14   ;;  %s803_s13 = sphi %s849_s13, %s1150_s13   ;;  %s799_s12 = sphi %s847_s12, %s1149_s12  }
   0xb   : > { %s529_s19 = sadd.s32 4294967294, %s819_s17   ;;  %s34_s20 = sadd.s32 1, %s815_s16 }
   0xc   : > { %s43_s21 = sadd.s32 1, %s807_s14  ;;  %p36_p0 = scmp.ge.s32.totalorder %s34_s20, 2 }
   0xd   : > { %p50_p1 = scmp.ne.s32.totalorder %s807_s14, %s803_s13  ;;  %p51_p2 = scmp.eq.s32.totalorder %s819_s17, 0 }
   0xe   : > { %p56_p3 = scmp.ne.s32.totalorder %s803_s13, %s799_s12  ;;  %s1153_s20 = smov (%p36_p0, %s34_s20), 0 }
   0xf   : > { %1128 = sst [smem:[#allocation13_spill]] %s1153_s20  ;;  %p890_p4 = por %p51_p2, %p50_p1 }
  0x10   : > { %p57_p5 = scmp.eq.s32.totalorder %s878_s18, 0  ;;  %s38_s23 = ssub.s32 %s815_s16, %s1153_s20 }
  0x11   : > { %p134_p6 = scmp.eq.s32.totalorder %s878_s18, 1  ;;  %p41_p7 = scmp.eq.s32.totalorder %s38_s23, 0 }
  0x12   : > { %p898_p8 = por %p57_p5, %p56_p3  ;;  %p140_p10 = scmp.eq.s32.totalorder %s529_s19, 1 }
  0x13   : > { %p902_p9 = por %p134_p6, %p50_p1  ;;  %p587_p13 = scmp.lt.s32.totalorder %s819_s17, 2 }
  0x14   : > { %s1130_s24 = scalar_select %p898_p8, 1, 0 }
  0x15   : > { %s1131_s25 = scalar_select %p902_p9, 1, 0 }
  0x16   : > { %s907_s26 = scalar_select %p41_p7, %s807_s14, %s43_s21  }
  0x17   : > { %p909_p11 = por %p140_p10, %p56_p3  ;;  %s160_s28 = sand.u32 1, %s807_s14  }
  0x18   : > { %1132 = sst [smem:[#allocation14_spill]] %s907_s26  ;;  %s918_s29 = sshll.u32 %s160_s28, 3 }
  0x19   : > { %s1133_s27 = scalar_select %p909_p11, 1, 0 }
  0x1a   : > { %s921_s30 = sshll.u32 %s815_s16, 7  ;;  %p925_p0 = pnand %p587_p13, %p890_p4 }
  0x1b   : > { %s179_s5 = sand.u32 1, %s819_s17   ;;  %s1135_s1 = sld [smem:[#allocation15_spill]] }
  0x1c   : > { %s1134_s4 = scalar_select %p925_p0, 1, 0 }
  0x1d   : > { %s183_s9 = scalar_lea.vmem [#allocation5], %s918_s29  ;;  %s941_s11 = scalar_lea.sflag [#allocation6], %s179_s5 }
  0x1e   : > { %s190_s10 = sshll.u32 %s183_s9, 4  ;;  %p947_p4 = pneg %p925_p0  ;;  %s938_s10 = int_to_ptr.vmem [resolvable:$true] %s190_s10 }
  0x21   : > { %s934_s8 = scalar_lea.hbm %s1135_s1, %s921_s30  ;;  %s648_s6 = scalar_lea.hbm %s1135_s1, 256 }
  0x22   : > { %s643_s19 = scalar_lea.hbm %s934_s8, 128  ;;  %p649_p7 = scmp.lt.u32.totalorder %s934_s8, %s1135_s1 }
  0x23   : > { %p644_p3 = scmp.ne.s32.totalorder %s934_s8, %s643_s19  ;;  %p650_p10 = scmp.lt.u32.totalorder %s648_s6, %s643_s19 }
  0x24   : > { %p652_p12 = scmp.lt.u32.totalorder %s643_s19, %s934_s8 }
  0x25   : > { %p646_p5 = pnand %p947_p4, %p644_p3  ;;  %p651_p13 = por %p650_p10, %p649_p7 }
  0x27   : > { %p647_p6 = pneg %p646_p5  ;;  %p653_p1 = por %p652_p12, %p651_p13 }
  0x29   : > { %p654_p2 = pnand %p653_p1, %p647_p6 }
  0x2b   : > { %657 = shalt.err (!%p654_p2)
}
  0x2c   : > { %s658_s5 = scalar_lea.vmem %s938_s10, 128  ;;  %s821_s22 = smov [#allocation5]  }
  0x2d   : > { %p659_p3 = scmp.ne.s32.totalorder %s938_s10, %s658_s5  ;;  %s663_s23 = sshll.u32 %s821_s22, 4  ;;  %s664_s23 = int_to_ptr.vmem [resolvable:$false] %s663_s23 }
  0x2e   : > { %s665_s7 = scalar_lea.vmem %s664_s23, 256  ;;  %p666_p9 = scmp.lt.s32.totalorder %s938_s10, %s664_s23 }
  0x2f   : > { %p661_p5 = pnand %p659_p3, %p947_p4  ;;  %p667_p8 = scmp.lt.s32.totalorder %s665_s7, %s658_s5 }
  0x31   : > { %p662_p11 = pneg %p661_p5  ;;  %p668_p7 = por %p667_p8, %p666_p9 }
  0x33   : > { %p669_p10 = pnand %p668_p7, %p662_p11 }
  0x35   : > { %672 = shalt.err (!%p669_p10)
}
  0x36   : > { %579 = dma.hbm_to_vmem [thread:$0]  (!%p925_p0), %s934_s8, 128, %s938_s10, %s941_s11  }
  0x37   : > { %p1137_p12 = scmp.lt.s32.totalorder %s819_s17, 3  ;;  %p1138_p1 = scmp.ge.s32.totalorder %s819_s17, 1 }
  0x38   : > { %s983_s5 = scalar_lea.hbm %s1117_s0, %s921_s30  ;;  %s164_s22 = scalar_lea.vmem [#allocation2], %s918_s29 }
  0x39   : > { %p975_p2 = pnand %p1138_p1, %p1137_p12  ;;  %s172_s23 = sshll.u32 %s164_s22, 4  ;;  %s986_s23 = int_to_ptr.vmem [resolvable:$true] %s172_s23 }
  0x3a   : > { %s992_s7 = scalar_lea.hbm %s1119_s2, %s921_s30  ;;  %s161_s1 = scalar_lea.sflag [#allocation3], %s160_s28 }
  0x3b   : > { %s1139_s19 = scalar_select %p975_p2, 1, 0 }
  0x3c   : > { %s673_s20 = scalar_lea.hbm %s983_s5, 128  ;;  %s678_s16 = scalar_lea.hbm %s1117_s0, 256 }
  0x3d   : > { %p674_p8 = scmp.ne.s32.totalorder %s983_s5, %s673_s20  ;;  %p679_p6 = scmp.lt.u32.totalorder %s983_s5, %s1117_s0 }
  0x3e   : > { %p680_p13 = scmp.lt.u32.totalorder %s678_s16, %s673_s20  ;;  %p682_p5 = scmp.lt.u32.totalorder %s673_s20, %s983_s5 }
  0x3f   : > { %p676_p9 = pnand %p674_p8, %p947_p4 }
  0x40   : > { %p681_p3 = por %p680_p13, %p679_p6 }
  0x41   : > { %p677_p11 = pneg %p676_p9 }
  0x42   : > { %p683_p7 = por %p682_p5, %p681_p3 }
  0x44   : > { %p684_p10 = pnand %p683_p7, %p677_p11 }
  0x46   : > { %687 = shalt.err (!%p684_p10)
}
  0x47   : > { %s688_s28 = scalar_lea.vmem %s986_s23, 128  ;;  %s822_s30 = smov [#allocation2]  }
  0x48   : > { %p689_p12 = scmp.ne.s32.totalorder %s986_s23, %s688_s28  ;;  %s693_s8 = sshll.u32 %s822_s30, 4  ;;  %s694_s8 = int_to_ptr.vmem [resolvable:$false] %s693_s8 }
  0x49   : > { %s695_s26 = scalar_lea.vmem %s694_s8, 256  ;;  %p696_p9 = scmp.lt.s32.totalorder %s986_s23, %s694_s8 }
  0x4a   : > { %p691_p1 = pnand %p689_p12, %p947_p4  ;;  %p697_p2 = scmp.lt.s32.totalorder %s695_s26, %s688_s28 }
  0x4c   : > { %p692_p8 = pneg %p691_p1  ;;  %p698_p6 = por %p697_p2, %p696_p9 }
  0x4e   : > { %p699_p13 = pnand %p698_p6, %p692_p8 }
  0x50   : > { %702 = shalt.err (!%p699_p13)
}
  0x51   : > { %576 = dma.hbm_to_vmem [thread:$0]  (!%p925_p0), %s983_s5, 128, %s986_s23, %s161_s1  }
  0x52   : > { %s201_s16 = scalar_lea.vmem [#allocation7], %s918_s29  ;;  %s703_s10 = scalar_lea.hbm %s992_s7, 128 }
  0x53   : > { %s208_s20 = sshll.u32 %s201_s16, 4  ;;  %p704_p11 = scmp.ne.s32.totalorder %s992_s7, %s703_s10  ;;  %s209_s20 = int_to_ptr.vmem [resolvable:$true] %s208_s20 }
  0x54   : > { %s708_s22 = scalar_lea.hbm %s1119_s2, 256  ;;  %p709_p5 = scmp.lt.u32.totalorder %s992_s7, %s1119_s2 }
  0x55   : > { %p706_p2 = pnand %p704_p11, %p947_p4  ;;  %p710_p7 = scmp.lt.u32.totalorder %s708_s22, %s703_s10 }
  0x56   : > { %p712_p12 = scmp.lt.u32.totalorder %s703_s10, %s992_s7 }
  0x57   : > { %p707_p3 = pneg %p706_p2  ;;  %p711_p10 = por %p710_p7, %p709_p5 }
  0x59   : > { %p713_p1 = por %p712_p12, %p711_p10 }
  0x5b   : > { %p714_p8 = pnand %p713_p1, %p707_p3 }
  0x5d   : > { %717 = shalt.err (!%p714_p8)
}
  0x5e   : > { %s718_s1 = scalar_lea.vmem %s209_s20, 128  ;;  %s823_s29 = smov [#allocation7]  }
  0x5f   : > { %p719_p9 = scmp.ne.s32.totalorder %s209_s20, %s718_s1  ;;  %s723_s5 = sshll.u32 %s823_s29, 4  ;;  %s724_s5 = int_to_ptr.vmem [resolvable:$false] %s723_s5 }
  0x60   : > { %s725_s23 = scalar_lea.vmem %s724_s5, 256  ;;  %p726_p11 = scmp.lt.s32.totalorder %s209_s20, %s724_s5 }
  0x61   : > { %p721_p6 = pnand %p719_p9, %p947_p4  ;;  %p727_p2 = scmp.lt.s32.totalorder %s725_s23, %s718_s1 }
  0x63   : > { %p722_p13 = pneg %p721_p6  ;;  %p728_p0 = por %p727_p2, %p726_p11 }
  0x65   : > { %p729_p5 = pnand %p728_p0, %p722_p13 }
  0x67   : > { %732 = shalt.err (!%p729_p5)
}
  0x68   : > { %p1140_p7 = scmp.ne.s32.totalorder %s1134_s4, 0  ;;  %p1141_p3 = scmp.ne.s32.totalorder %s1139_s19, 0 }
  0x69   : > { %s1039_s21 = sand.u32 (!%p1141_p3), 1, %s803_s13   ;;  %p1142_p0 = scmp.ne.s32.totalorder (!%p1141_p3), %s1130_s24, 0 }
  0x6a   : > { %582 = dma.hbm_to_vmem [thread:$0]  (!%p1140_p7), %s992_s7, 128, %s209_s20, %s941_s11  }
  0x6b   : > { %217 = sbr.rel (%p1141_p3) target bundleno = 729 (0x2d9), region = 32  ;;  %s1042_s8 = sshll.u32 (!%p1141_p3), %s1039_s21, 3 }
  0x6c   : > { %s220_s26 = scalar_lea.sflag (!%p1141_p3), [#allocation3], %s1039_s21  ;;  %s223_s16 = scalar_lea.vmem (!%p1141_p3), [#allocation2], %s1042_s8 }
  0x72   : > { %786 = dma.done.wait (%p1142_p0), %s220_s26, 128  }
  0x73   : > { %788 = vsyncadd (%p1142_p0), %s220_s26, 4294967168  ;;  %s228_s4 = sand.u32 1, %s878_s18   ;;  %s232_s19 = scalar_lea.vmem [#allocation5], %s1042_s8 }
  0x74   : > { %s229_s11 = scalar_lea.sflag [#allocation6], %s228_s4 }
  0x75   : > { %790 = dma.done.wait (%p1142_p0), %s229_s11, 256  }
  0x76   : > { %792 = vsyncadd (%p1142_p0), %s229_s11, 4294967040  ;;  %v824_v0 = vmov 0.0   ;;  %vm825_vm0 = vmmov 0   ;;  %v278_v1 = vld [vmem:[%s232_s19] sm:$0xff]  ;;  %vm280_vm1 = vcmask 261120   ;;  %v275_v2 = vld [vmem:[%s223_s16] sm:$0xff] }
  0x77   : > { %553 = vmatprep.subr.bf16.mxu0 %v824_v0  ;;  %555 = vmatprep.mubr.msk.bf16.mxu0 %vm825_vm0, %v824_v0  ;;  %v279_v3 = vpack.c.bf16 %v278_v1, %v278_v1  ;;  %v276_v5 = vmul.f32 0.17677669, %v275_v2  ;;  %vm327_vm2 = vcmask 64512   ;;  %s241_s18 = scalar_lea.vmem [#allocation7], %s1042_s8  ;;  %vm343_vm3 = vcmask 1043456   ;;  %s546_s24 = sshll.u32 %s811_s15, 7 }
  0x78   : > { %559 = vmatprep.subr.bf16.mxu1 %v824_v0  ;;  %561 = vmatprep.mubr.msk.bf16.mxu1 %vm825_vm0, %v824_v0  ;;  %v338_v12 = vld [vmem:[%s241_s18] sm:$0xff]  ;;  %s273_s7 = scalar_lea.vmem [#allocation8], %s1042_s8  ;;  %s1067_s9 = scalar_lea.hbm %s1120_s3, %s546_s24 }
  0x79   : > { %v285_v4 = vsel %vm280_vm1, %v279_v3, 0  ;;  %v277_v6 = vpack.c.bf16 %v276_v5, %v276_v5  ;;  %v339_v13 = vpack.c.bf16 %v338_v12, %v338_v12  ;;  %s405_s20 = sshll.u32 %s273_s7, 4  ;;  %s391_s15 = scalar_lea.sflag [#allocation4], %s1039_s21  ;;  %s1069_s20 = int_to_ptr.vmem [resolvable:$true] %s405_s20 }
  0x7a   : > { %554 = vmatpush3.bf16.xpose.msra.mxu0 %v285_v4  ;;  %s733_s22 = scalar_lea.vmem %s1069_s20, 128  ;;  %p1143_p10 = scmp.ne.s32.totalorder %s1131_s25, 0 }
  0x7b   : > { %v345_v14 = vsel %vm343_vm3, %v339_v13, 0  ;;  %p734_p4 = scmp.ne.s32.totalorder %s1069_s20, %s733_s22  ;;  %s826_s28 = smov [#allocation8]  }
  0x7c   : > { %560 = vmatpush3.bf16.msra.mxu1 %v345_v14  ;;  %s737_s30 = sshll.u32 %s826_s28, 4  ;;  %s738_s30 = int_to_ptr.vmem [resolvable:$false] %s737_s30 }
  0x7d   : > { %p735_p12 = pnand %p734_p4, %p1143_p10  ;;  %s739_s1 = scalar_lea.vmem %s738_s30, 256 }
  0x7e   : > { %p740_p8 = scmp.lt.s32.totalorder %s1069_s20, %s738_s30  ;;  %p741_p9 = scmp.lt.s32.totalorder %s739_s1, %s733_s22 }
  0x7f   : > { %p736_p1 = pneg %p735_p12 }
  0x80   : > { %p742_p6 = por %p741_p9, %p740_p8 }
  0x81   : > { %556 = vmatmul.mubr.msk.bf16.vlgmr.msra.gmra.mrb[0].mxu0 %vm280_vm1, %v277_v6 }
  0x82   : > { %p743_p13 = pnand %p742_p6, %p736_p1 }
 0x154   : > { %v321_v7 = vpop.f32.mrb[0].mxu0 }
 0x155   : > { %v557_v8 = vpop.f32.mrb[1].mxu0  ;;  %v328_v9 = vsel %vm327_vm2, %v321_v7, -inf }
 0x156   : > { %329 = vmax.xlane.f32.xlu0 %v328_v9  ;;  %v324_v10 = vpop.f32.mrb[2].mxu0 }
 0x157   : > { %v558_v11 = vpop.f32.mrb[3].mxu0 }
 0x1e3   : > { %v330_v15 = vpop.xlane.xlu0 %329 }
 0x1e4   : > { %v331_v16 = vsub.f32 %v321_v7, %v330_v15 }
 0x1e6   : > { %v332_v17 = vmul.f32 1.442695, %v331_v16 }
 0x1e8   : > { %639 = vpow2.f32 %v332_v17 }
 0x1f2   : > { %v640_v18 = vpop.eup %639 }
 0x1f3   : > { %v334_v19 = vsel %vm327_vm2, %v640_v18, 0.0  ;;  %v337_v20 = vpack.c.bf16 %v640_v18, %v640_v18 }
 0x1f4   : > { %335 = vadd.xlane.f32.xlu0 %v334_v19 }
 0x1f5   : > { %562 = vmatmul.mubr.msk.bf16.vlgmr.msra.gmra.mrb[0].mxu1 %vm327_vm2, %v337_v20 }
 0x281   : > { %v336_v21 = vpop.xlane.xlu0 %335 }
 0x282   : > { %641 = vrcp.f32 %v336_v21 }
 0x28c   : > { %v642_v22 = vpop.eup %641 }
 0x2c8   : > { %v381_v23 = vpop.f32.mrb[0].mxu1 }
 0x2c9   : > { %v388_v24 = vmul.f32 %v642_v22, %v381_v23  ;;  %v563_v25 = vpop.f32.mrb[1].mxu1 }
 0x2ca   : > { %v384_v26 = vpop.f32.mrb[2].mxu1 }
 0x2cb   : > { %v564_v27 = vpop.f32.mrb[3].mxu1  ;;  %389 = vst.msk [vmem:[%s273_s7] sm:$0xff] %vm280_vm1, %v388_v24 }
 0x2cc   : > { %746 = shalt.err (!%p743_p13)
}
 0x2cd   : > { %s747_s29 = scalar_lea.hbm %s1067_s9, 128  ;;  %s751_s21 = scalar_lea.hbm %s1120_s3, 256 }
 0x2ce   : > { %p748_p11 = scmp.ne.s32.totalorder %s1067_s9, %s747_s29  ;;  %p752_p7 = scmp.lt.u32.totalorder %s1067_s9, %s1120_s3 }
 0x2cf   : > { %p753_p3 = scmp.lt.u32.totalorder %s751_s21, %s747_s29  ;;  %p755_p4 = scmp.lt.u32.totalorder %s747_s29, %s1067_s9 }
 0x2d0   : > { %p749_p2 = pnand %p748_p11, %p1143_p10 }
 0x2d1   : > { %p754_p0 = por %p753_p3, %p752_p7 }
 0x2d2   : > { %p750_p5 = pneg %p749_p2 }
 0x2d3   : > { %p756_p12 = por %p755_p4, %p754_p0 }
 0x2d5   : > { %p757_p1 = pnand %p756_p12, %p750_p5 }
 0x2d7   : > { %760 = shalt.err (!%p757_p1)
}
 0x2d8   : > { %571 = dma.vmem_to_hbm [thread:$0]  (%p1143_p10), %s1069_s20, 128, %s1067_s9, %s391_s15  }
 0x2d9 PF: > { %s417_s16 = sand.u32 1, %s799_s12   ;;  %p1144_p8 = scmp.ne.s32.totalorder %s1133_s27, 0 }
 0x2da   : > { %p1145_p9 = scmp.ge.s32.totalorder %s819_s17, 2  ;;  %s418_s4 = scalar_lea.sflag [#allocation4], %s417_s16 }
 0x2dc   : > { %p584_p6 = pnand %p1145_p9, %p1144_p8 }
 0x2de   : > { %794 = dma.done.wait (!%p584_p6), %s418_s4, 128  }
 0x2df   : > { %796 = vsyncadd (!%p584_p6), %s418_s4, 4294967168  ;;  %s22_s17 = sadd.s32 1, %s819_s17   ;;  %s1146_s25 = sld [smem:[#allocation14_spill]] }
 0x2e0   : > { %p19_p13 = scmp.ge.s32.totalorder %s22_s17, 4   ;;  %s1147_s15 = sld [smem:[#allocation12_spill]] }
 0x2e1   : > { %s1148_s16 = sld [smem:[#allocation13_spill]]  ;;  %s1149_s12 = smov %s803_s13 }
 0x2e2   : > { %s1150_s13 = smov %s807_s14  ;;  %21 = sbr.rel (!%p19_p13) target bundleno = 10 (0xa), region = 101 }
 0x2e5   : > { %s1151_s14 = smov %s1146_s25 }
 0x2e9   :  { %423 = vsyncpa [#allocation3], 1 }
 0x2ea   :  { %425 = vsyncpa [#allocation3 + $0x1], 1 }
 0x2eb   :  { %426 = vsyncpa [#allocation6], 1 }
 0x2ec   :  { %428 = vsyncpa [#allocation6 + $0x1], 1 }
 0x2ed   :  { %429 = vsyncpa [#allocation4], 1 }
 0x2ee   :  { %431 = vsyncpa [#allocation4 + $0x1], 1 }

</bundles_post_ra>
